<compile_context>
chip_gen: v7x
topology: tpu7x:2x2x1
jax: 0.10.0
libtpu: 0.0.40
codegen_flags: <defaults>
</compile_context>

<pallas_src>
import jax
import jax.numpy as jnp
from jax.experimental import pallas as pl
from jax.experimental.pallas import tpu as pltpu

_LANES = 128                     # vreg lane width -> full-width unmasked vst
_SMALL_FAST_PATH_BYTES = 64 * 1024  # below this, a fused XLA clip beats a kernel launch


def _max_row_tile() -> int:
    """Generation-tiered streaming tile height (rows of 128 f32 lanes)."""
    try:
        kind = jax.devices()[0].device_kind.lower()
    except Exception:
        kind = ""
    if ("v6" in kind) or ("v7" in kind):
        # 4 MiB tile; in+out double-buffered = 16 MiB < 32 MiB default scoped VMEM.
        return 8192
    # v5e (16 MiB default scoped VMEM) and anything unknown: 2 MiB tile -> 8 MiB.
    return 4096


def _round_up(x: int, m: int) -> int:
    return ((x + m - 1) // m) * m


def _clamp_kernel(x_ref, o_ref):
    # clamp_to_valid_range() fused with forward(): out = clip(param, 0, 1)
    o_ref[...] = jnp.clip(x_ref[...], 0.0, 1.0)


def edited_image_forward(edited_image: jax.Array) -> jax.Array:
    """forward(): returns the trainable parameter unchanged (zero-copy identity)."""
    return edited_image


def edited_image_clamped_forward(edited_image: jax.Array) -> jax.Array:
    """clamp_to_valid_range() (+ forward) as a single Pallas kernel.

    Lane-dense (rows, 128) view of the original buffer (no pads, no post-slice),
    input/output aliased for in-place semantics, tiled 'parallel' grid.
    """
    orig_shape = edited_image.shape
    dtype = edited_image.dtype
    n = edited_image.size
    itemsize = jnp.dtype(dtype).itemsize

    # Tiny images (and any 0-sized corner case): fused XLA clip is strictly faster
    # than a custom-call launch and it fuses with surrounding ops.
    if n * itemsize < _SMALL_FAST_PATH_BYTES:
        return jnp.clip(edited_image, 0.0, 1.0)

    # Non-lane-divisible sizes: a single fused XLA clip (1 RW pass) beats the old
    # pad -> kernel -> slice path (~3x HBM traffic).
    if n % _LANES != 0:
        # TODO(synk): could DMA-handle the ragged lane tail in-kernel; not worth it
        # for a pure-bandwidth clip.
        return jnp.clip(edited_image, 0.0, 1.0)

    rows = n // _LANES
    x2d = edited_image.reshape(rows, _LANES)  # zero-cost lane-dense view, no pad

    max_tile = _max_row_tile()
    if rows <= max_tile:
        if rows >= 16:
            # Split into >=2 grid steps so both v7x TensorCores get work.
            row_tile = _round_up(pl.cdiv(rows, 2), 8)
        else:
            row_tile = rows  # full-extent block (legal even if not 8-aligned)
    else:
        row_tile = max_tile
    grid_rows = pl.cdiv(rows, row_tile)
    # Ragged final block (rows % row_tile != 0) is handled by Pallas automatically:
    # out-of-bounds reads are padded, out-of-bounds writes are masked.

    out2d = pl.pallas_call(
        _clamp_kernel,
        out_shape=jax.ShapeDtypeStruct((rows, _LANES), dtype),
        grid=(grid_rows,),
        in_specs=[pl.BlockSpec((row_tile, _LANES), lambda i: (i, 0))],
        out_specs=pl.BlockSpec((row_tile, _LANES), lambda i: (i, 0)),
        # Alias the real (reshaped-view) parameter buffer; with caller-side
        # donation this is a true in-place clamp_ (no extra HBM allocation).
        input_output_aliases={0: 0},
        cost_estimate=pl.CostEstimate(
            flops=n, transcendentals=0, bytes_accessed=2 * n * itemsize
        ),
        compiler_params=pltpu.CompilerParams(
            dimension_semantics=("parallel",),  # megacore sharding on v7x
        ),
    )(x2d)

    return out2d.reshape(orig_shape)


# In-place flavour matching PyTorch's clamp_: the caller's parameter buffer is
# donated so input_output_aliases={0:0} can genuinely reuse the HBM buffer.
clamp_to_valid_range = jax.jit(edited_image_clamped_forward, donate_argnums=0)


if __name__ == "__main__":
    key = jax.random.PRNGKey(0)

    # --- small image: matches the original test scale, takes the XLA fast path ---
    B, C, H, W = 1, 3, 16, 16  # NCHW, 768 elems = 3 KiB
    k0, k1 = jax.random.split(key)
    small_image = jax.random.uniform(
        k0, (B, C, H, W), dtype=jnp.float32, minval=-0.2, maxval=1.2
    )

    out = jax.block_until_ready(edited_image_forward(small_image))
    assert out.shape == (B, C, H, W) and out.dtype == jnp.float32
    assert jnp.array_equal(out, small_image), "forward() must return the parameter unchanged"

    small_clamped = jax.block_until_ready(edited_image_clamped_forward(small_image))
    assert jnp.allclose(small_clamped, jnp.clip(small_image, 0.0, 1.0))

    # --- larger image: exercises the Pallas kernel (lane-dense, 2+ grid steps) ---
    Hb, Wb = 128, 128  # 1*3*128*128 = 49152 elems = 192 KiB -> Pallas path
    big_image = jax.random.uniform(
        k1, (1, 3, Hb, Wb), dtype=jnp.float32, minval=-0.3, maxval=1.3
    )
    expected_big = jax.block_until_ready(jnp.clip(big_image, 0.0, 1.0))

    big_clamped = jax.block_until_ready(edited_image_clamped_forward(big_image))
    assert big_clamped.shape == big_image.shape and big_clamped.dtype == jnp.float32
    assert jnp.allclose(big_clamped, expected_big)

    # In-place (donated) variant: donate a fresh buffer, do not touch it afterwards.
    param_buf = jnp.array(big_image)
    in_place = jax.block_until_ready(clamp_to_valid_range(param_buf))
    assert jnp.allclose(in_place, expected_big)

    # TODO(synk): nn.Parameter / autograd bookkeeping is handled functionally by JAX
    # (the "parameter" is just the input array here), so there is nothing to port.

    print("KERNEL_OK")
</pallas_src>

<mosaic_0001>
module attributes {stable_mosaic.version = 11 : i64} {
  func.func @_clamp_kernel(%arg0: i32, %arg1: memref<192x128xf32, #tpu.memory_space<vmem>>, %arg2: memref<192x128xf32, #tpu.memory_space<vmem>>) attributes {dimension_semantics = [#tpu.dimension_semantics<parallel>], iteration_bounds = array<i64: 2>, scalar_prefetch = 0 : i64, scratch_operands = 0 : i64, tpu.core_type = #tpu.core_type<tc>, window_params = [{transform_indices = @transform_0, window_bounds = array<i64: 192, 128>}, {transform_indices = @transform_1, window_bounds = array<i64: 192, 128>}]} {
    %c0 = arith.constant 0 : index
    %c0_0 = arith.constant 0 : index
    %0 = vector.load %arg1[%c0, %c0_0] : memref<192x128xf32, #tpu.memory_space<vmem>>, vector<192x128xf32>
    %cst = arith.constant 0.000000e+00 : f32
    %cst_1 = arith.constant 1.000000e+00 : f32
    %1 = vector.broadcast %cst : f32 to vector<192x128xf32>
    %2 = arith.maximumf %1, %0 : vector<192x128xf32>
    %3 = vector.broadcast %cst_1 : f32 to vector<192x128xf32>
    %4 = arith.minimumf %3, %2 : vector<192x128xf32>
    %c0_2 = arith.constant 0 : index
    %c0_3 = arith.constant 0 : index
    %5 = vector.load %arg2[%c0_2, %c0_3] : memref<192x128xf32, #tpu.memory_space<vmem>>, vector<192x128xf32>
    tpu.vector_store %arg2[%c0_2, %c0_3], %4 {strides = array<i32>} : memref<192x128xf32, #tpu.memory_space<vmem>>, vector<192x128xf32>,
    return
  }
  func.func @transform_0(%arg0: i32) -> (i32, i32) {
    %c0_i32 = arith.constant 0 : i32
    %c0_i32_0 = arith.constant 0 : i32
    return %arg0, %c0_i32 : i32, i32
  }
  func.func @transform_1(%arg0: i32) -> (i32, i32) {
    %c0_i32 = arith.constant 0 : i32
    %c0_i32_0 = arith.constant 0 : i32
    return %arg0, %c0_i32 : i32, i32
  }
}

</mosaic_0001>

<bundles_post_ra>
// kernel: tpu_custom_call.1
= control target key start
LH: loop header
LB: loop body
LE: loop exit
PB: predicated region body
PF: predicated region fallthrough
CT: control target
= control target key end

     0   :  { %6 = vsyncpa [#allocation3], 0  ;;  %s711_s0 = inlined_call_operand.hbm [shape: f32[384,128], index: 0, kind: input, shape index: {}, may-alias: {0,1}]   ;;  %s712_s1 = inlined_call_operand.hbm [shape: f32[384,128], index: 1, kind: output, shape index: {}, may-alias: {0,1}]  }
   0x1   :  { %8 = vsyncpa [#allocation3 + $0x1], 0 }
   0x2   :  { %9 = vsyncpa [#allocation4], 0 }
   0x3   :  { %11 = vsyncpa [#allocation4 + $0x1], 0  ;;  %s496_s6 = smov 0   ;;  %s498_s7 = smov 0  }
   0x4   :  { %s500_s8 = smov 0   ;;  %s502_s9 = smov 0  }
   0x5 LB: > { %s517_s10 = sadd.s32 4294967295, %s478_s9   ;;  %s320_s11 = sadd.s32 4294967294, %s478_s9   ;;  %s478_s9 = sphi %s502_s9, %s724_s9   ;;  %s474_s8 = sphi %s500_s8, %s723_s8   ;;  %s470_s7 = sphi %s498_s7, %s722_s7   ;;  %s466_s6 = sphi %s496_s6, %s721_s6  }
   0x6   : > { %s521_s12 = sadd.s32 1, %s478_s9   ;;  %s24_s13 = sadd.s32 1, %s474_s8 }
   0x7   : > { %s21_s14 = ssub.s32 %s478_s9, %s521_s12  ;;  %p31_p0 = scmp.ne.s32.totalorder %s474_s8, %s470_s7 }
   0x8   : > { %p22_p1 = scmp.eq.s32.totalorder %s21_s14, 0  ;;  %p32_p2 = scmp.eq.s32.totalorder %s478_s9, 0 }
   0x9   : > { %p37_p3 = scmp.ne.s32.totalorder %s470_s7, %s466_s6  ;;  %p38_p4 = scmp.eq.s32.totalorder %s517_s10, 0 }
   0xa   : > { %s533_s15 = scalar_select %p22_p1, %s474_s8, %s24_s13  }
   0xb   : > { %p33_p5 = por %p32_p2, %p31_p0  ;;  %p535_p6 = por %p38_p4, %p37_p3 }
   0xc   : > { %p61_p7 = scmp.eq.s32.totalorder %s517_s10, 1  ;;  %p67_p8 = scmp.eq.s32.totalorder %s320_s11, 1 }
   0xd   : > { %p344_p10 = scmp.lt.s32.totalorder %s478_s9, 2  ;;  %s87_s19 = sand.u32 1, %s474_s8  }
   0xe   : > { %p542_p11 = por %p61_p7, %p31_p0  ;;  %p546_p12 = por %p67_p8, %p37_p3 }
   0xf   : > { %s328_s20 = smul.u32 3072, %s478_s9  ;;  %p557_p13 = pnand %p344_p10, %p33_p5 }
  0x10   : > { %s715_s17 = scalar_select %p542_p11, 1, 0 }
  0x11   : > { %s716_s18 = scalar_select %p546_p12, 1, 0 }
  0x12   : > { %s330_s21 = smul.u32 192, %s87_s19  ;;  %s555_s24 = scalar_lea.hbm %s711_s0, %s328_s20 }
  0x13   : > { %s563_s28 = scalar_lea.sflag [#allocation3], %s87_s19  ;;  %s382_s29 = scalar_lea.hbm %s555_s24, 3072 }
  0x14   : > { %s91_s26 = scalar_lea.vmem [#allocation2], %s330_s21  ;;  %p383_p0 = scmp.ne.s32.totalorder %s555_s24, %s382_s29 }
  0x15   : > { %s98_s27 = sshll.u32 %s91_s26, 4  ;;  %p384_p1 = pneg %p557_p13  ;;  %s561_s27 = int_to_ptr.vmem [resolvable:$true] %s98_s27 }
  0x16   : > { %s387_s3 = scalar_lea.hbm %s711_s0, 6144  ;;  %p388_p4 = scmp.lt.u32.totalorder %s555_s24, %s711_s0 }
  0x17   : > { %p385_p2 = pnand %p384_p1, %p383_p0  ;;  %p389_p5 = scmp.lt.u32.totalorder %s387_s3, %s382_s29 }
  0x18   : > { %p391_p8 = scmp.lt.u32.totalorder %s382_s29, %s555_s24 }
  0x19   : > { %p386_p3 = pneg %p385_p2  ;;  %p390_p7 = por %p389_p5, %p388_p4 }
  0x1b   : > { %p392_p10 = por %p391_p8, %p390_p7 }
  0x1d   : > { %p393_p9 = pnand %p392_p10, %p386_p3 }
  0x1f   : > { %396 = shalt.err (!%p393_p9)
}
  0x20   : > { %s397_s11 = scalar_lea.vmem %s561_s27, 3072  ;;  %s480_s13 = smov [#allocation2]  }
  0x21   : > { %p398_p0 = scmp.ne.s32.totalorder %s561_s27, %s397_s11  ;;  %s402_s14 = sshll.u32 %s480_s13, 4  ;;  %s403_s14 = int_to_ptr.vmem [resolvable:$false] %s402_s14 }
  0x22   : > { %s404_s19 = scalar_lea.vmem %s403_s14, 6144  ;;  %p405_p11 = scmp.lt.s32.totalorder %s561_s27, %s403_s14 }
  0x23   : > { %p400_p2 = pnand %p398_p0, %p384_p1  ;;  %p406_p4 = scmp.lt.s32.totalorder %s404_s19, %s397_s11 }
  0x25   : > { %p401_p12 = pneg %p400_p2  ;;  %p407_p5 = por %p406_p4, %p405_p11 }
  0x27   : > { %p408_p7 = pnand %p407_p5, %p401_p12 }
  0x29   : > { %411 = shalt.err (!%p408_p7)
}
  0x2a   : > { %s481_s20 = smov 128   ;;  %s482_s21 = smov 8  }
  0x2b   : > { %339 = dma.hbm_to_vmem [thread:$0]  (!%p557_p13), %s555_s24, 3072, %s561_s27, %s563_s28, %s481_s20, %s481_s20, %s482_s21  }
  0x2c   : > { %p324_p9 = scmp.ge.s32.totalorder %s478_s9, 1  ;;  %p106_p1 = scmp.lt.s32.totalorder %s478_s9, 3 }
  0x2e   : > { %p107_p3 = pnand %p324_p9, %p106_p1 }
  0x2f   : > { %s594_s22 = sand.u32 (!%p107_p3), 1, %s470_s7  }
  0x30   : > { %110 = sbr.rel (%p107_p3) target bundleno = 95 (0x5f), region = 24  ;;  %s113_s26 = scalar_lea.sflag (!%p107_p3), [#allocation3], %s594_s22 }
  0x31   : > { %s331_s23 = smul.u32 (!%p107_p3), 192, %s594_s22 }
  0x33   : > { %s600_s29 = scalar_lea.vmem (!%p107_p3), [#allocation2], %s331_s23 }
  0x37   : > { %457 = dma.done.wait (%p535_p6), %s113_s26, 3072  }
  0x38   : > { %459 = vsyncadd (%p535_p6), %s113_s26, 4294964224  ;;  %v137_v0 = vld [vmem:[%s600_s29] sm:$0xff]  ;;  %v138_v1 = vld [vmem:[%s600_s29 + $0x8] sm:$0xff]  ;;  %s329_s24 = smul.u32 3072, %s517_s10  ;;  %s622_s16 = scalar_lea.vmem [#allocation5], %s331_s23 }
  0x39   : > { %v139_v2 = vld [vmem:[%s600_s29 + $0x10] sm:$0xff]  ;;  %v161_v3 = vmax.f32 %v137_v0, 0.0  ;;  %v162_v4 = vmax.f32 %v138_v1, 0.0  ;;  %v140_v6 = vld [vmem:[%s600_s29 + $0x18] sm:$0xff]  ;;  %v141_v7 = vld [vmem:[%s600_s29 + $0x20] sm:$0xff]  ;;  %s247_s25 = sshll.u32 %s622_s16, 4  ;;  %s655_s25 = int_to_ptr.vmem [resolvable:$true] %s247_s25 }
  0x3a   : > { %v163_v5 = vmax.f32 %v139_v2, 0.0  ;;  %v142_v8 = vld [vmem:[%s600_s29 + $0x28] sm:$0xff]  ;;  %v164_v9 = vmax.f32 %v140_v6, 0.0  ;;  %v165_v10 = vmax.f32 %v141_v7, 0.0  ;;  %v143_v12 = vld [vmem:[%s600_s29 + $0x30] sm:$0xff]  ;;  %v144_v13 = vld [vmem:[%s600_s29 + $0x38] sm:$0xff]  ;;  %s665_s30 = scalar_lea.hbm %s712_s1, %s329_s24 }
  0x3b   : > { %v166_v11 = vmax.f32 %v142_v8, 0.0  ;;  %v145_v14 = vld [vmem:[%s600_s29 + $0x40] sm:$0xff]  ;;  %v185_v15 = vmin.f32 %v161_v3, 1.0  ;;  %v186_v16 = vmin.f32 %v162_v4, 1.0  ;;  %v167_v18 = vmax.f32 %v143_v12, 0.0  ;;  %v146_v19 = vld [vmem:[%s600_s29 + $0x48] sm:$0xff] }
  0x3c   : > { %v187_v17 = vmin.f32 %v163_v5, 1.0  ;;  %v147_v20 = vld [vmem:[%s600_s29 + $0x50] sm:$0xff]  ;;  %v188_v21 = vmin.f32 %v164_v9, 1.0  ;;  %v189_v22 = vmin.f32 %v165_v10, 1.0  ;;  %v168_v24 = vmax.f32 %v144_v13, 0.0  ;;  %v148_v25 = vld [vmem:[%s600_s29 + $0x58] sm:$0xff] }
  0x3d   : > { %v190_v23 = vmin.f32 %v166_v11, 1.0  ;;  %v149_v26 = vld [vmem:[%s600_s29 + $0x60] sm:$0xff]  ;;  %209 = vst [vmem:[%s622_s16] sm:$0xff] %v185_v15  ;;  %210 = vst [vmem:[%s622_s16 + $0x8] sm:$0xff] %v186_v16  ;;  %v191_v27 = vmin.f32 %v167_v18, 1.0  ;;  %v169_v28 = vmax.f32 %v145_v14, 0.0  ;;  %v170_v29 = vmax.f32 %v146_v19, 0.0 }
  0x3e   : > { %211 = vst [vmem:[%s622_s16 + $0x10] sm:$0xff] %v187_v17  ;;  %v171_v30 = vmax.f32 %v147_v20, 0.0  ;;  %v150_v31 = vld [vmem:[%s600_s29 + $0x68] sm:$0xff]  ;;  %v151_v32 = vld [vmem:[%s600_s29 + $0x70] sm:$0xff]  ;;  %212 = vst [vmem:[%s622_s16 + $0x18] sm:$0xff] %v188_v21  ;;  %v192_v33 = vmin.f32 %v168_v24, 1.0 }
  0x3f   : > { %213 = vst [vmem:[%s622_s16 + $0x20] sm:$0xff] %v189_v22  ;;  %214 = vst [vmem:[%s622_s16 + $0x28] sm:$0xff] %v190_v23  ;;  %v172_v34 = vmax.f32 %v148_v25, 0.0  ;;  %v173_v35 = vmax.f32 %v149_v26, 0.0  ;;  %v174_v36 = vmax.f32 %v150_v31, 0.0  ;;  %v152_v37 = vld [vmem:[%s600_s29 + $0x78] sm:$0xff] }
  0x40   : > { %v153_v38 = vld [vmem:[%s600_s29 + $0x80] sm:$0xff]  ;;  %215 = vst [vmem:[%s622_s16 + $0x30] sm:$0xff] %v191_v27  ;;  %v193_v39 = vmin.f32 %v169_v28, 1.0  ;;  %v194_v40 = vmin.f32 %v170_v29, 1.0  ;;  %v195_v41 = vmin.f32 %v171_v30, 1.0  ;;  %v175_v42 = vmax.f32 %v151_v32, 0.0 }
  0x41   : > { %v154_v43 = vld [vmem:[%s600_s29 + $0x88] sm:$0xff]  ;;  %v155_v44 = vld [vmem:[%s600_s29 + $0x90] sm:$0xff]  ;;  %216 = vst [vmem:[%s622_s16 + $0x38] sm:$0xff] %v192_v33  ;;  %v196_v45 = vmin.f32 %v172_v34, 1.0  ;;  %v197_v46 = vmin.f32 %v173_v35, 1.0  ;;  %v198_v47 = vmin.f32 %v174_v36, 1.0 }
  0x42   : > { %v176_v48 = vmax.f32 %v152_v37, 0.0  ;;  %v156_v49 = vld [vmem:[%s600_s29 + $0x98] sm:$0xff]  ;;  %v157_v50 = vld [vmem:[%s600_s29 + $0xa0] sm:$0xff]  ;;  %217 = vst [vmem:[%s622_s16 + $0x40] sm:$0xff] %v193_v39  ;;  %218 = vst [vmem:[%s622_s16 + $0x48] sm:$0xff] %v194_v40  ;;  %v199_v51 = vmin.f32 %v175_v42, 1.0 }
  0x43   : > { %219 = vst [vmem:[%s622_s16 + $0x50] sm:$0xff] %v195_v41  ;;  %v177_v52 = vmax.f32 %v153_v38, 0.0  ;;  %v178_v53 = vmax.f32 %v154_v43, 0.0  ;;  %v179_v54 = vmax.f32 %v155_v44, 0.0  ;;  %v158_v55 = vld [vmem:[%s600_s29 + $0xa8] sm:$0xff]  ;;  %v159_v56 = vld [vmem:[%s600_s29 + $0xb0] sm:$0xff] }
  0x44   : > { %220 = vst [vmem:[%s622_s16 + $0x58] sm:$0xff] %v196_v45  ;;  %221 = vst [vmem:[%s622_s16 + $0x60] sm:$0xff] %v197_v46  ;;  %v200_v57 = vmin.f32 %v176_v48, 1.0  ;;  %v180_v58 = vmax.f32 %v156_v49, 0.0  ;;  %v181_v59 = vmax.f32 %v157_v50, 0.0  ;;  %v182_v60 = vmax.f32 %v158_v55, 0.0 }
  0x45   : > { %222 = vst [vmem:[%s622_s16 + $0x68] sm:$0xff] %v198_v47  ;;  %v160_v61 = vld [vmem:[%s600_s29 + $0xb8] sm:$0xff]  ;;  %223 = vst [vmem:[%s622_s16 + $0x70] sm:$0xff] %v199_v51  ;;  %v201_v62 = vmin.f32 %v177_v52, 1.0  ;;  %v202_v63 = vmin.f32 %v178_v53, 1.0  ;;  %v203_v0 = vmin.f32 %v179_v54, 1.0 }
  0x46   : > { %v183_v1 = vmax.f32 %v159_v56, 0.0  ;;  %224 = vst [vmem:[%s622_s16 + $0x78] sm:$0xff] %v200_v57  ;;  %v204_v2 = vmin.f32 %v180_v58, 1.0  ;;  %v205_v3 = vmin.f32 %v181_v59, 1.0  ;;  %v206_v4 = vmin.f32 %v182_v60, 1.0  ;;  %s234_s2 = scalar_lea.sflag [#allocation4], %s594_s22 }
  0x47   : > { %v184_v5 = vmax.f32 %v160_v61, 0.0  ;;  %225 = vst [vmem:[%s622_s16 + $0x80] sm:$0xff] %v201_v62  ;;  %226 = vst [vmem:[%s622_s16 + $0x88] sm:$0xff] %v202_v63  ;;  %s412_s3 = scalar_lea.vmem %s655_s25, 3072  ;;  %p718_p11 = scmp.ne.s32.totalorder %s715_s17, 0 }
  0x48   : > { %227 = vst [vmem:[%s622_s16 + $0x90] sm:$0xff] %v203_v0  ;;  %v207_v6 = vmin.f32 %v183_v1, 1.0  ;;  %228 = vst [vmem:[%s622_s16 + $0x98] sm:$0xff] %v204_v2  ;;  %p413_p6 = scmp.ne.s32.totalorder %s655_s25, %s412_s3  ;;  %s483_s4 = smov [#allocation5]  }
  0x49   : > { %229 = vst [vmem:[%s622_s16 + $0xa0] sm:$0xff] %v205_v3  ;;  %230 = vst [vmem:[%s622_s16 + $0xa8] sm:$0xff] %v206_v4  ;;  %v208_v7 = vmin.f32 %v184_v5, 1.0  ;;  %s416_s5 = sshll.u32 %s483_s4, 4  ;;  %s417_s5 = int_to_ptr.vmem [resolvable:$false] %s416_s5 }
  0x4a   : > { %231 = vst [vmem:[%s622_s16 + $0xb0] sm:$0xff] %v207_v6  ;;  %p414_p12 = pnand %p413_p6, %p718_p11  ;;  %s418_s11 = scalar_lea.vmem %s417_s5, 6144 }
  0x4b   : > { %232 = vst [vmem:[%s622_s16 + $0xb8] sm:$0xff] %v208_v7  ;;  %p419_p8 = scmp.lt.s32.totalorder %s655_s25, %s417_s5  ;;  %p420_p10 = scmp.lt.s32.totalorder %s418_s11, %s412_s3 }
  0x4c   : > { %p415_p13 = pneg %p414_p12 }
  0x4d   : > { %p421_p0 = por %p420_p10, %p419_p8 }
  0x4f   : > { %p422_p2 = pnand %p421_p0, %p415_p13 }
  0x51   : > { %425 = shalt.err (!%p422_p2)
}
  0x52   : > { %s426_s10 = scalar_lea.hbm %s665_s30, 3072  ;;  %s430_s19 = scalar_lea.hbm %s712_s1, 6144 }
  0x53   : > { %p427_p4 = scmp.ne.s32.totalorder %s665_s30, %s426_s10  ;;  %p431_p9 = scmp.lt.u32.totalorder %s665_s30, %s712_s1 }
  0x54   : > { %p432_p1 = scmp.lt.u32.totalorder %s430_s19, %s426_s10  ;;  %p434_p6 = scmp.lt.u32.totalorder %s426_s10, %s665_s30 }
  0x55   : > { %p428_p5 = pnand %p427_p4, %p718_p11 }
  0x56   : > { %p433_p3 = por %p432_p1, %p431_p9 }
  0x57   : > { %p429_p7 = pneg %p428_p5 }
  0x58   : > { %p435_p12 = por %p434_p6, %p433_p3 }
  0x5a   : > { %p436_p13 = pnand %p435_p12, %p429_p7 }
  0x5c   : > { %439 = shalt.err (!%p436_p13)
}
  0x5d   : > { %s484_s23 = smov 128   ;;  %s485_s26 = smov 8  }
  0x5e   : > { %334 = dma.vmem_to_hbm [thread:$0]  (%p718_p11), %s655_s25, 3072, %s665_s30, %s234_s2, %s484_s23, %s484_s23, %s485_s26  }
  0x5f PF: > { %s262_s29 = sand.u32 1, %s466_s6   ;;  %p719_p8 = scmp.ne.s32.totalorder %s716_s18, 0 }
  0x60   : > { %p720_p10 = scmp.ge.s32.totalorder %s478_s9, 2  ;;  %s263_s24 = scalar_lea.sflag [#allocation4], %s262_s29 }
  0x62   : > { %p341_p0 = pnand %p720_p10, %p719_p8 }
  0x64   : > { %461 = dma.done.wait (!%p341_p0), %s263_s24, 3072  }
  0x65   : > { %463 = vsyncadd (!%p341_p0), %s263_s24, 4294964224  ;;  %p14_p2 = scmp.ge.s32.totalorder %s521_s12, 4   ;;  %s721_s6 = smov %s470_s7 }
  0x66   : > { %s722_s7 = smov %s474_s8  ;;  %s723_s8 = smov %s533_s15 }
  0x67   : > { %s724_s9 = smov %s521_s12  ;;  %16 = sbr.rel (!%p14_p2) target bundleno = 5 (0x5), region = 69 }
  0x6e   :  { %268 = vsyncpa [#allocation3], 1 }
  0x6f   :  { %270 = vsyncpa [#allocation3 + $0x1], 1 }
  0x70   :  { %271 = vsyncpa [#allocation4], 1 }
  0x71   :  { %273 = vsyncpa [#allocation4 + $0x1], 1 }

</bundles_post_ra>
